<compile_context>
chip_gen: v5e
topology: v5e:2x2
jax: 0.10.0
libtpu: 0.0.40
codegen_flags: <defaults>
</compile_context>

<pallas_src>
import functools

import jax
import jax.numpy as jnp
from jax.experimental import pallas as pl
from jax.experimental.pallas import tpu as pltpu

_BN_EPS = 1e-5
_LRELU_SLOPE = 0.5
_HID = 100


def _round_up(n, m):
    return ((n + m - 1) // m) * m


def _pad2(a, rows, cols, dtype=None):
    r, c = a.shape
    out = jnp.pad(a, ((0, rows - r), (0, cols - c)))
    return out if dtype is None else out.astype(dtype)


# ----------------------------------------------------------------------------
# Fused kernel body: rep_net (Linear+BN+LeakyReLU stack) + fc_net Linear
# ----------------------------------------------------------------------------
def _bn_lrelu(y, gamma, beta, inv_b):
    # Training-mode BatchNorm1d (biased batch stats), single reduction pass
    # around a row-0 pivot for numerical stability, all in f32.
    d = y - y[0:1, :]
    s1 = jnp.sum(d, axis=0, keepdims=True)
    s2 = jnp.sum(d * d, axis=0, keepdims=True)
    mean_d = s1 * inv_b
    var = jnp.maximum(s2 * inv_b - mean_d * mean_d, 0.0)
    y_hat = (d - mean_d) * jax.lax.rsqrt(var + _BN_EPS)
    a = gamma * y_hat + beta
    # LeakyReLU(negative_slope=0.5): slope < 1  =>  max(a, 0.5*a)
    return jnp.maximum(a, _LRELU_SLOPE * a)


def _make_fused_kernel(num_rep_layers, linear_model, inp_dim, hid_kpad):
    """Builds the fused kernel; layer count and dims are trace-time constants."""

    if linear_model:
        def kernel(x_ref, w0_ref, vec_ref, fcw_ref, out_ref, z_ref):
            xb = x_ref[...].astype(jnp.bfloat16)
            h = (jnp.dot(xb, w0_ref[...], preferred_element_type=jnp.float32)
                 + vec_ref[0][0:1, :])                      # rep Linear bias (f32)
            z_ref[...] = h
            zb = h[:, :inp_dim].astype(jnp.bfloat16)
            out_ref[...] = (jnp.dot(zb, fcw_ref[...],
                                    preferred_element_type=jnp.float32)
                            + vec_ref[1][0:1, :])           # fc bias (f32)
        return kernel

    def kernel(x_ref, w0_ref, wstk_ref, vec_ref, fcw_ref, out_ref, z_ref):
        inv_b = 1.0 / x_ref.shape[0]
        # Layer 0: Linear(inp_dim -> 100). Its bias is omitted: it cancels
        # exactly under the batch-mean subtraction of training-mode BN.
        xb = x_ref[...].astype(jnp.bfloat16)                 # x stays unpadded
        y = jnp.dot(xb, w0_ref[...], preferred_element_type=jnp.float32)
        gb = vec_ref[0]
        h = _bn_lrelu(y, gb[0:1, :], gb[1:2, :], inv_b)
        # Layers 1 .. L-1: every contraction dim == 100, padded to hid_kpad.
        for i in range(1, num_rep_layers):
            hb = h[:, :hid_kpad].astype(jnp.bfloat16)
            y = jnp.dot(hb, wstk_ref[i - 1],
                        preferred_element_type=jnp.float32)
            gb = vec_ref[i]
            h = _bn_lrelu(y, gb[0:1, :], gb[1:2, :], inv_b)
        z_ref[...] = h                                       # lane-dense store
        zb = h[:, :inp_dim].astype(jnp.bfloat16)
        out_ref[...] = (jnp.dot(zb, fcw_ref[...],
                                preferred_element_type=jnp.float32)
                        + vec_ref[num_rep_layers][0:1, :])   # fc bias (f32)
    return kernel


# ----------------------------------------------------------------------------
# Parameter construction (deterministic, PyTorch-default-style init)
# ----------------------------------------------------------------------------
def _init_linear(key, din, dout):
    kw, kb = jax.random.split(key)
    bound = 1.0 / jnp.sqrt(float(din))
    w = jax.random.uniform(kw, (din, dout), jnp.float32, -bound, bound)
    b = jax.random.uniform(kb, (1, dout), jnp.float32, -bound, bound)
    return w, b


def make_fc_params(key, inp_dim, num_tasks, num_layers, linear_model):
    # Common padded lane width (all output / BN-vector lanes), multiple of 128
    # so every matmul result and both output slabs are lane-dense.
    lane_w = max(_round_up(d, 128) for d in (_HID, inp_dim, num_tasks))
    hid_kpad = _round_up(_HID, 16)   # bf16 sublane quantum for stacked K dim

    params = {
        "linear_model": linear_model, "inp_dim": inp_dim,
        "num_tasks": num_tasks, "num_layers": num_layers,
        "lane_pad": lane_w, "hid_kpad": hid_kpad, "rep": [],
    }

    if linear_model:
        k0, kfc = jax.random.split(key)
        w, b = _init_linear(k0, inp_dim, inp_dim)
        params["rep"].append({"kind": "linear", "w": w, "b": b})
        fw, fb = _init_linear(kfc, inp_dim, num_tasks)
        params["fc"] = {"w": fw, "b": fb}
        # Packed kernel operands (bf16 weights, zero pads).
        params["w0_pad"] = _pad2(w, inp_dim, lane_w, jnp.bfloat16)
        params["fcw_pad"] = _pad2(fw, inp_dim, lane_w, jnp.bfloat16)
        zero_row = jnp.zeros((1, lane_w), jnp.float32)
        params["vec_pad"] = jnp.stack([
            jnp.concatenate([_pad2(b, 1, lane_w), zero_row], axis=0),
            jnp.concatenate([_pad2(fb, 1, lane_w), zero_row], axis=0),
        ])                                                   # (2, 2, lane_w)
        return params

    # Matches nn.Sequential layout: first (inp->100), max(L-2,0) x (100->100),
    # last (100->inp).
    dims = [inp_dim, _HID] + [_HID] * max(num_layers - 2, 0) + [inp_dim]
    n_rep = len(dims) - 1
    keys = jax.random.split(key, n_rep + 1)

    vec_rows, stack_ws = [], []
    for i in range(n_rep):
        w, b = _init_linear(keys[i], dims[i], dims[i + 1])
        g = jnp.ones((1, dims[i + 1]), jnp.float32)      # BN weight init = 1
        beta = jnp.zeros((1, dims[i + 1]), jnp.float32)  # BN bias init = 0
        params["rep"].append({"kind": "lin_bn_lrelu", "w": w, "b": b,
                              "gamma": g, "beta": beta})
        # IMPORTANT: gamma/beta padded with ZEROS (never 1) so padded lanes of
        # every activation stay exactly 0.
        vec_rows.append(jnp.concatenate(
            [_pad2(g, 1, lane_w), _pad2(beta, 1, lane_w)], axis=0))
        if i == 0:
            params["w0_pad"] = _pad2(w, inp_dim, lane_w, jnp.bfloat16)
        else:
            stack_ws.append(_pad2(w, hid_kpad, lane_w, jnp.bfloat16))
    params["wstack_pad"] = jnp.stack(stack_ws)           # (n_rep-1, 112, lane_w)

    fw, fb = _init_linear(keys[-1], inp_dim, num_tasks)
    params["fc"] = {"w": fw, "b": fb}
    params["fcw_pad"] = _pad2(fw, inp_dim, lane_w, jnp.bfloat16)
    vec_rows.append(jnp.concatenate(
        [_pad2(fb, 1, lane_w), jnp.zeros((1, lane_w), jnp.float32)], axis=0))
    params["vec_pad"] = jnp.stack(vec_rows)              # (n_rep+1, 2, lane_w)
    return params


# ----------------------------------------------------------------------------
# Forward pass: one fused pallas_call for the whole module
# ----------------------------------------------------------------------------
def fc_forward(params, x):
    B, inp_dim = x.shape
    lane_w = params["lane_pad"]
    linear_model = params["linear_model"]
    n_rep = len(params["rep"])

    if linear_model:
        inputs = [x, params["w0_pad"], params["vec_pad"], params["fcw_pad"]]
        flops = 2 * B * (inp_dim * lane_w + inp_dim * lane_w)
        transc = 0
    else:
        inputs = [x, params["w0_pad"], params["wstack_pad"], params["vec_pad"],
                  params["fcw_pad"]]
        flops = 2 * B * (inp_dim * lane_w
                         + (n_rep - 1) * params["hid_kpad"] * lane_w
                         + inp_dim * lane_w)
        transc = n_rep * lane_w

    bytes_accessed = int(sum(a.size * a.dtype.itemsize for a in inputs)
                         + 2 * B * lane_w * 4)

    kernel = _make_fused_kernel(n_rep, linear_model, inp_dim, params["hid_kpad"])
    vmem = pl.BlockSpec(memory_space=pltpu.MemorySpace.VMEM)

    out_pad, z_pad = pl.pallas_call(
        kernel,
        out_shape=(jax.ShapeDtypeStruct((B, lane_w), jnp.float32),
                   jax.ShapeDtypeStruct((B, lane_w), jnp.float32)),
        in_specs=[vmem] * len(inputs),
        out_specs=(vmem, vmem),
        cost_estimate=pl.CostEstimate(flops=flops, transcendentals=transc,
                                      bytes_accessed=bytes_accessed),
    )(*inputs)

    # Strip the lane padding outside the kernel (cheap XLA slice).
    return out_pad[:, :params["num_tasks"]], z_pad[:, :inp_dim]


# ----------------------------------------------------------------------------
# Pure-JAX reference (unpadded, keeps the Linear bias before BN).
# matmul_dtype=bfloat16 emulates the kernel's mixed precision (bf16 operands,
# f32 accumulation); float32 reproduces the exact PyTorch-module numerics.
# ----------------------------------------------------------------------------
def fc_forward_ref(params, x, matmul_dtype=jnp.float32):
    def mm(a, w):
        return jnp.dot(a.astype(matmul_dtype), w.astype(matmul_dtype),
                       preferred_element_type=jnp.float32)

    z = x
    for layer in params["rep"]:
        y = mm(z, layer["w"]) + layer["b"]
        if layer["kind"] == "linear":
            z = y
        else:
            mean = jnp.mean(y, axis=0, keepdims=True)
            var = jnp.mean((y - mean) ** 2, axis=0, keepdims=True)
            y_hat = (y - mean) / jnp.sqrt(var + _BN_EPS)
            a = layer["gamma"] * y_hat + layer["beta"]
            z = jnp.where(a >= 0, a, _LRELU_SLOPE * a)
    out = mm(z, params["fc"]["w"]) + params["fc"]["b"]
    return out, z


# ----------------------------------------------------------------------------
if __name__ == "__main__":
    key = jax.random.PRNGKey(0)
    kp, kx, kp2 = jax.random.split(key, 3)

    batch, inp_dim, num_tasks, num_layers = 8, 32, 4, 3
    x = jax.random.normal(kx, (batch, inp_dim), jnp.float32)

    # --- non-linear rep_net (Linear + BatchNorm1d + LeakyReLU stack) ---
    params = make_fc_params(kp, inp_dim, num_tasks, num_layers, linear_model=False)
    out, z = jax.jit(functools.partial(fc_forward, params))(x)
    jax.block_until_ready((out, z))
    assert out.shape == (batch, num_tasks) and z.shape == (batch, inp_dim)

    # Strict check vs the precision-matched reference (isolates kernel bugs
    # from bf16 rounding of the matmul operands).
    out_r, z_r = fc_forward_ref(params, x, matmul_dtype=jnp.bfloat16)
    assert jnp.allclose(out, out_r, rtol=1e-2, atol=1e-2)
    assert jnp.allclose(z, z_r, rtol=1e-2, atol=1e-2)
    # Loose sanity check vs the exact f32 PyTorch-semantics reference (gap is
    # only the bf16 rounding of the matmul operands).
    out_f, z_f = fc_forward_ref(params, x, matmul_dtype=jnp.float32)
    assert float(jnp.max(jnp.abs(out - out_f))) < 0.15
    assert float(jnp.max(jnp.abs(z - z_f))) < 0.15

    # --- linear_model=True path (single plain Linear rep_net) ---
    params_lin = make_fc_params(kp2, inp_dim, num_tasks, num_layers, linear_model=True)
    out2, z2 = jax.jit(functools.partial(fc_forward, params_lin))(x)
    jax.block_until_ready((out2, z2))
    assert out2.shape == (batch, num_tasks) and z2.shape == (batch, inp_dim)

    out2_r, z2_r = fc_forward_ref(params_lin, x, matmul_dtype=jnp.bfloat16)
    assert jnp.allclose(out2, out2_r, rtol=1e-2, atol=1e-2)
    assert jnp.allclose(z2, z2_r, rtol=1e-2, atol=1e-2)
    out2_f, z2_f = fc_forward_ref(params_lin, x, matmul_dtype=jnp.float32)
    assert float(jnp.max(jnp.abs(out2 - out2_f))) < 0.15
    assert float(jnp.max(jnp.abs(z2 - z2_f))) < 0.15

    print("KERNEL_OK")
</pallas_src>

<mosaic_0001>
module attributes {stable_mosaic.version = 11 : i64} {
  func.func @kernel(%arg0: memref<8x32xf32, #tpu.memory_space<vmem>>, %arg1: memref<32x128xbf16, #tpu.memory_space<vmem>>, %arg2: memref<2x112x128xbf16, #tpu.memory_space<vmem>>, %arg3: memref<4x2x128xf32, #tpu.memory_space<vmem>>, %arg4: memref<32x128xbf16, #tpu.memory_space<vmem>>, %arg5: memref<8x128xf32, #tpu.memory_space<vmem>>, %arg6: memref<8x128xf32, #tpu.memory_space<vmem>>) attributes {dimension_semantics = [], scalar_prefetch = 0 : i64, scratch_operands = 0 : i64, tpu.core_type = #tpu.core_type<tc>} {
    %c0 = arith.constant 0 : index
    %c0_0 = arith.constant 0 : index
    %0 = vector.load %arg0[%c0, %c0_0] : memref<8x32xf32, #tpu.memory_space<vmem>>, vector<8x32xf32>
    %1 = arith.truncf %0 : vector<8x32xf32> to vector<8x32xbf16>
    %c0_1 = arith.constant 0 : index
    %c0_2 = arith.constant 0 : index
    %2 = vector.load %arg1[%c0_1, %c0_2] : memref<32x128xbf16, #tpu.memory_space<vmem>>, vector<32x128xbf16>
    %cst = arith.constant dense<0.000000e+00> : vector<8x128xf32>
    %3 = tpu.matmul %1, %2, %cst {dimension_numbers = #tpu.dot_dimension_numbers<[1], [0], [0], [1], [0, 0, 1, 1], [], []>} : vector<8x32xbf16>, vector<32x128xbf16>, vector<8x128xf32> -> vector<8x128xf32>
    %c0_3 = arith.constant 0 : index
    %c0_4 = arith.constant 0 : index
    %c0_5 = arith.constant 0 : index
    %4 = vector.load %arg3[%c0_3, %c0_4, %c0_5] : memref<4x2x128xf32, #tpu.memory_space<vmem>>, vector<1x2x128xf32>
    %5 = vector.shape_cast %4 : vector<1x2x128xf32> to vector<2x128xf32>
    %6 = vector.extract_strided_slice %5 {offsets = [0, 0], sizes = [1, 128], strides = [1, 1]} : vector<2x128xf32> to vector<1x128xf32>
    %7 = vector.extract_strided_slice %5 {offsets = [1, 0], sizes = [1, 128], strides = [1, 1]} : vector<2x128xf32> to vector<1x128xf32>
    %8 = vector.extract_strided_slice %3 {offsets = [0, 0], sizes = [1, 128], strides = [1, 1]} : vector<8x128xf32> to vector<1x128xf32>
    %9 = vector.broadcast %8 : vector<1x128xf32> to vector<8x128xf32>
    %10 = arith.subf %3, %9 : vector<8x128xf32>
    %cst_6 = arith.constant dense<0.000000e+00> : vector<128xf32>
    %11 = vector.multi_reduction <add>, %10, %cst_6 [0] : vector<8x128xf32> to vector<128xf32>
    %12 = vector.shape_cast %11 : vector<128xf32> to vector<1x128xf32>
    %13 = arith.mulf %10, %10 : vector<8x128xf32>
    %cst_7 = arith.constant dense<0.000000e+00> : vector<128xf32>
    %14 = vector.multi_reduction <add>, %13, %cst_7 [0] : vector<8x128xf32> to vector<128xf32>
    %15 = vector.shape_cast %14 : vector<128xf32> to vector<1x128xf32>
    %cst_8 = arith.constant 1.250000e-01 : f32
    %16 = vector.broadcast %cst_8 : f32 to vector<1x128xf32>
    %17 = arith.mulf %12, %16 : vector<1x128xf32>
    %cst_9 = arith.constant 1.250000e-01 : f32
    %18 = vector.broadcast %cst_9 : f32 to vector<1x128xf32>
    %19 = arith.mulf %15, %18 : vector<1x128xf32>
    %20 = arith.mulf %17, %17 : vector<1x128xf32>
    %21 = arith.subf %19, %20 : vector<1x128xf32>
    %cst_10 = arith.constant 0.000000e+00 : f32
    %22 = vector.broadcast %cst_10 : f32 to vector<1x128xf32>
    %23 = arith.maximumf %21, %22 : vector<1x128xf32>
    %24 = vector.broadcast %17 : vector<1x128xf32> to vector<8x128xf32>
    %25 = arith.subf %10, %24 : vector<8x128xf32>
    %cst_11 = arith.constant 9.99999974E-6 : f32
    %26 = vector.broadcast %cst_11 : f32 to vector<1x128xf32>
    %27 = arith.addf %23, %26 : vector<1x128xf32>
    %28 = math.rsqrt %27 : vector<1x128xf32>
    %29 = vector.broadcast %28 : vector<1x128xf32> to vector<8x128xf32>
    %30 = arith.mulf %25, %29 : vector<8x128xf32>
    %31 = vector.broadcast %6 : vector<1x128xf32> to vector<8x128xf32>
    %32 = arith.mulf %31, %30 : vector<8x128xf32>
    %33 = vector.broadcast %7 : vector<1x128xf32> to vector<8x128xf32>
    %34 = arith.addf %32, %33 : vector<8x128xf32>
    %cst_12 = arith.constant 5.000000e-01 : f32
    %35 = vector.broadcast %cst_12 : f32 to vector<8x128xf32>
    %36 = arith.mulf %35, %34 : vector<8x128xf32>
    %37 = arith.maximumf %34, %36 : vector<8x128xf32>
    %38 = vector.extract_strided_slice %37 {offsets = [0, 0], sizes = [8, 112], strides = [1, 1]} : vector<8x128xf32> to vector<8x112xf32>
    %39 = arith.truncf %38 : vector<8x112xf32> to vector<8x112xbf16>
    %c0_13 = arith.constant 0 : index
    %c0_14 = arith.constant 0 : index
    %c0_15 = arith.constant 0 : index
    %40 = vector.load %arg2[%c0_13, %c0_14, %c0_15] : memref<2x112x128xbf16, #tpu.memory_space<vmem>>, vector<1x112x128xbf16>
    %41 = vector.shape_cast %40 : vector<1x112x128xbf16> to vector<112x128xbf16>
    %cst_16 = arith.constant dense<0.000000e+00> : vector<8x128xf32>
    %42 = tpu.matmul %39, %41, %cst_16 {dimension_numbers = #tpu.dot_dimension_numbers<[1], [0], [0], [1], [0, 0, 1, 1], [], []>} : vector<8x112xbf16>, vector<112x128xbf16>, vector<8x128xf32> -> vector<8x128xf32>
    %c1 = arith.constant 1 : index
    %c0_17 = arith.constant 0 : index
    %c0_18 = arith.constant 0 : index
    %43 = vector.load %arg3[%c1, %c0_17, %c0_18] : memref<4x2x128xf32, #tpu.memory_space<vmem>>, vector<1x2x128xf32>
    %44 = vector.shape_cast %43 : vector<1x2x128xf32> to vector<2x128xf32>
    %45 = vector.extract_strided_slice %44 {offsets = [0, 0], sizes = [1, 128], strides = [1, 1]} : vector<2x128xf32> to vector<1x128xf32>
    %46 = vector.extract_strided_slice %44 {offsets = [1, 0], sizes = [1, 128], strides = [1, 1]} : vector<2x128xf32> to vector<1x128xf32>
    %47 = vector.extract_strided_slice %42 {offsets = [0, 0], sizes = [1, 128], strides = [1, 1]} : vector<8x128xf32> to vector<1x128xf32>
    %48 = vector.broadcast %47 : vector<1x128xf32> to vector<8x128xf32>
    %49 = arith.subf %42, %48 : vector<8x128xf32>
    %cst_19 = arith.constant dense<0.000000e+00> : vector<128xf32>
    %50 = vector.multi_reduction <add>, %49, %cst_19 [0] : vector<8x128xf32> to vector<128xf32>
    %51 = vector.shape_cast %50 : vector<128xf32> to vector<1x128xf32>
    %52 = arith.mulf %49, %49 : vector<8x128xf32>
    %cst_20 = arith.constant dense<0.000000e+00> : vector<128xf32>
    %53 = vector.multi_reduction <add>, %52, %cst_20 [0] : vector<8x128xf32> to vector<128xf32>
    %54 = vector.shape_cast %53 : vector<128xf32> to vector<1x128xf32>
    %cst_21 = arith.constant 1.250000e-01 : f32
    %55 = vector.broadcast %cst_21 : f32 to vector<1x128xf32>
    %56 = arith.mulf %51, %55 : vector<1x128xf32>
    %cst_22 = arith.constant 1.250000e-01 : f32
    %57 = vector.broadcast %cst_22 : f32 to vector<1x128xf32>
    %58 = arith.mulf %54, %57 : vector<1x128xf32>
    %59 = arith.mulf %56, %56 : vector<1x128xf32>
    %60 = arith.subf %58, %59 : vector<1x128xf32>
    %cst_23 = arith.constant 0.000000e+00 : f32
    %61 = vector.broadcast %cst_23 : f32 to vector<1x128xf32>
    %62 = arith.maximumf %60, %61 : vector<1x128xf32>
    %63 = vector.broadcast %56 : vector<1x128xf32> to vector<8x128xf32>
    %64 = arith.subf %49, %63 : vector<8x128xf32>
    %cst_24 = arith.constant 9.99999974E-6 : f32
    %65 = vector.broadcast %cst_24 : f32 to vector<1x128xf32>
    %66 = arith.addf %62, %65 : vector<1x128xf32>
    %67 = math.rsqrt %66 : vector<1x128xf32>
    %68 = vector.broadcast %67 : vector<1x128xf32> to vector<8x128xf32>
    %69 = arith.mulf %64, %68 : vector<8x128xf32>
    %70 = vector.broadcast %45 : vector<1x128xf32> to vector<8x128xf32>
    %71 = arith.mulf %70, %69 : vector<8x128xf32>
    %72 = vector.broadcast %46 : vector<1x128xf32> to vector<8x128xf32>
    %73 = arith.addf %71, %72 : vector<8x128xf32>
    %cst_25 = arith.constant 5.000000e-01 : f32
    %74 = vector.broadcast %cst_25 : f32 to vector<8x128xf32>
    %75 = arith.mulf %74, %73 : vector<8x128xf32>
    %76 = arith.maximumf %73, %75 : vector<8x128xf32>
    %77 = vector.extract_strided_slice %76 {offsets = [0, 0], sizes = [8, 112], strides = [1, 1]} : vector<8x128xf32> to vector<8x112xf32>
    %78 = arith.truncf %77 : vector<8x112xf32> to vector<8x112xbf16>
    %c1_26 = arith.constant 1 : index
    %c0_27 = arith.constant 0 : index
    %c0_28 = arith.constant 0 : index
    %79 = vector.load %arg2[%c1_26, %c0_27, %c0_28] : memref<2x112x128xbf16, #tpu.memory_space<vmem>>, vector<1x112x128xbf16>
    %80 = vector.shape_cast %79 : vector<1x112x128xbf16> to vector<112x128xbf16>
    %cst_29 = arith.constant dense<0.000000e+00> : vector<8x128xf32>
    %81 = tpu.matmul %78, %80, %cst_29 {dimension_numbers = #tpu.dot_dimension_numbers<[1], [0], [0], [1], [0, 0, 1, 1], [], []>} : vector<8x112xbf16>, vector<112x128xbf16>, vector<8x128xf32> -> vector<8x128xf32>
    %c2 = arith.constant 2 : index
    %c0_30 = arith.constant 0 : index
    %c0_31 = arith.constant 0 : index
    %82 = vector.load %arg3[%c2, %c0_30, %c0_31] : memref<4x2x128xf32, #tpu.memory_space<vmem>>, vector<1x2x128xf32>
    %83 = vector.shape_cast %82 : vector<1x2x128xf32> to vector<2x128xf32>
    %84 = vector.extract_strided_slice %83 {offsets = [0, 0], sizes = [1, 128], strides = [1, 1]} : vector<2x128xf32> to vector<1x128xf32>
    %85 = vector.extract_strided_slice %83 {offsets = [1, 0], sizes = [1, 128], strides = [1, 1]} : vector<2x128xf32> to vector<1x128xf32>
    %86 = vector.extract_strided_slice %81 {offsets = [0, 0], sizes = [1, 128], strides = [1, 1]} : vector<8x128xf32> to vector<1x128xf32>
    %87 = vector.broadcast %86 : vector<1x128xf32> to vector<8x128xf32>
    %88 = arith.subf %81, %87 : vector<8x128xf32>
    %cst_32 = arith.constant dense<0.000000e+00> : vector<128xf32>
    %89 = vector.multi_reduction <add>, %88, %cst_32 [0] : vector<8x128xf32> to vector<128xf32>
    %90 = vector.shape_cast %89 : vector<128xf32> to vector<1x128xf32>
    %91 = arith.mulf %88, %88 : vector<8x128xf32>
    %cst_33 = arith.constant dense<0.000000e+00> : vector<128xf32>
    %92 = vector.multi_reduction <add>, %91, %cst_33 [0] : vector<8x128xf32> to vector<128xf32>
    %93 = vector.shape_cast %92 : vector<128xf32> to vector<1x128xf32>
    %cst_34 = arith.constant 1.250000e-01 : f32
    %94 = vector.broadcast %cst_34 : f32 to vector<1x128xf32>
    %95 = arith.mulf %90, %94 : vector<1x128xf32>
    %cst_35 = arith.constant 1.250000e-01 : f32
    %96 = vector.broadcast %cst_35 : f32 to vector<1x128xf32>
    %97 = arith.mulf %93, %96 : vector<1x128xf32>
    %98 = arith.mulf %95, %95 : vector<1x128xf32>
    %99 = arith.subf %97, %98 : vector<1x128xf32>
    %cst_36 = arith.constant 0.000000e+00 : f32
    %100 = vector.broadcast %cst_36 : f32 to vector<1x128xf32>
    %101 = arith.maximumf %99, %100 : vector<1x128xf32>
    %102 = vector.broadcast %95 : vector<1x128xf32> to vector<8x128xf32>
    %103 = arith.subf %88, %102 : vector<8x128xf32>
    %cst_37 = arith.constant 9.99999974E-6 : f32
    %104 = vector.broadcast %cst_37 : f32 to vector<1x128xf32>
    %105 = arith.addf %101, %104 : vector<1x128xf32>
    %106 = math.rsqrt %105 : vector<1x128xf32>
    %107 = vector.broadcast %106 : vector<1x128xf32> to vector<8x128xf32>
    %108 = arith.mulf %103, %107 : vector<8x128xf32>
    %109 = vector.broadcast %84 : vector<1x128xf32> to vector<8x128xf32>
    %110 = arith.mulf %109, %108 : vector<8x128xf32>
    %111 = vector.broadcast %85 : vector<1x128xf32> to vector<8x128xf32>
    %112 = arith.addf %110, %111 : vector<8x128xf32>
    %cst_38 = arith.constant 5.000000e-01 : f32
    %113 = vector.broadcast %cst_38 : f32 to vector<8x128xf32>
    %114 = arith.mulf %113, %112 : vector<8x128xf32>
    %115 = arith.maximumf %112, %114 : vector<8x128xf32>
    %c0_39 = arith.constant 0 : index
    %c0_40 = arith.constant 0 : index
    %116 = vector.load %arg6[%c0_39, %c0_40] : memref<8x128xf32, #tpu.memory_space<vmem>>, vector<8x128xf32>
    tpu.vector_store %arg6[%c0_39, %c0_40], %115 {strides = array<i32>} : memref<8x128xf32, #tpu.memory_space<vmem>>, vector<8x128xf32>,
    %117 = vector.extract_strided_slice %115 {offsets = [0, 0], sizes = [8, 32], strides = [1, 1]} : vector<8x128xf32> to vector<8x32xf32>
    %118 = arith.truncf %117 : vector<8x32xf32> to vector<8x32xbf16>
    %c0_41 = arith.constant 0 : index
    %c0_42 = arith.constant 0 : index
    %119 = vector.load %arg4[%c0_41, %c0_42] : memref<32x128xbf16, #tpu.memory_space<vmem>>, vector<32x128xbf16>
    %cst_43 = arith.constant dense<0.000000e+00> : vector<8x128xf32>
    %120 = tpu.matmul %118, %119, %cst_43 {dimension_numbers = #tpu.dot_dimension_numbers<[1], [0], [0], [1], [0, 0, 1, 1], [], []>} : vector<8x32xbf16>, vector<32x128xbf16>, vector<8x128xf32> -> vector<8x128xf32>
    %c3 = arith.constant 3 : index
    %c0_44 = arith.constant 0 : index
    %c0_45 = arith.constant 0 : index
    %121 = vector.load %arg3[%c3, %c0_44, %c0_45] : memref<4x2x128xf32, #tpu.memory_space<vmem>>, vector<1x2x128xf32>
    %122 = vector.shape_cast %121 : vector<1x2x128xf32> to vector<2x128xf32>
    %123 = vector.extract_strided_slice %122 {offsets = [0, 0], sizes = [1, 128], strides = [1, 1]} : vector<2x128xf32> to vector<1x128xf32>
    %124 = vector.broadcast %123 : vector<1x128xf32> to vector<8x128xf32>
    %125 = arith.addf %120, %124 : vector<8x128xf32>
    %c0_46 = arith.constant 0 : index
    %c0_47 = arith.constant 0 : index
    %126 = vector.load %arg5[%c0_46, %c0_47] : memref<8x128xf32, #tpu.memory_space<vmem>>, vector<8x128xf32>
    tpu.vector_store %arg5[%c0_46, %c0_47], %125 {strides = array<i32>} : memref<8x128xf32, #tpu.memory_space<vmem>>, vector<8x128xf32>,
    return
  }
}

</mosaic_0001>

<bundles_post_ra>
// kernel: fc_forward.1
= control target key start
LH: loop header
LB: loop body
LE: loop exit
PB: predicated region body
PF: predicated region fallthrough
CT: control target
= control target key end

     0   :  { %12 = vsyncpa [#allocation3], 0  ;;  %s807_s0 = inlined_call_operand.hbm [shape: f32[8,32], index: 0, kind: input, shape index: {}]   ;;  %s808_s1 = inlined_call_operand.hbm [shape: bf16[32,128], index: 1, kind: input, shape index: {}]   ;;  %s809_s2 = inlined_call_operand.hbm [shape: bf16[2,112,128], index: 2, kind: input, shape index: {}]   ;;  %s810_s3 = inlined_call_operand.hbm [shape: f32[4,2,128], index: 3, kind: input, shape index: {}]   ;;  %s811_s4 = inlined_call_operand.hbm [shape: bf16[32,128], index: 4, kind: input, shape index: {}]   ;;  %s812_s5 = inlined_call_operand.vmem [shape: f32[8,128], index: 5, kind: output, shape index: {0}]   ;;  %s813_s6 = inlined_call_operand.hbm [shape: f32[8,128], index: 6, kind: output, shape index: {1}]  }
   0x1   :  { %13 = vsyncpa [#allocation6], 0 }
   0x2   :  { %14 = vsyncpa [#allocation9], 0  ;;  %s31_s23 = sshll.u32 %s808_s1, 4  ;;  %s32_s23 = int_to_ptr.hbm [resolvable:$true] %s31_s23 }
   0x3   :  { %15 = vsyncpa [#allocation4], 0  ;;  %s728_s24 = smov [#allocation5]   ;;  %s57_s28 = sshll.u32 %s810_s3, 4  ;;  %s58_s28 = int_to_ptr.hbm [resolvable:$true] %s57_s28 }
   0x4   :  { %s33_s25 = sshll.u32 %s728_s24, 4  ;;  %s729_s29 = smov 64   ;;  %s34_s25 = int_to_ptr.vmem [resolvable:$true] %s33_s25 }
   0x5   :  { %s730_s30 = smov 4   ;;  %s731_s7 = smov [#allocation8]  }
   0x6   :  { %39 = dma.hbm_to_vmem [thread:$0]  %s32_s23, 256, %s34_s25, [#allocation6], %s729_s29, %s729_s29, %s730_s30  }
   0x7   :  { %s59_s8 = sshll.u32 %s731_s7, 4  ;;  %s732_s1 = smov 32   ;;  %s60_s8 = int_to_ptr.vmem [resolvable:$true] %s59_s8 }
   0x8   :  { %s733_s9 = smov 2   ;;  %s21_s12 = sshll.u32 %s807_s0, 4  ;;  %s22_s12 = int_to_ptr.hbm [resolvable:$true] %s21_s12 }
   0x9   :  { %65 = dma.hbm_to_vmem [thread:$0]  %s58_s28, 128, %s60_s8, [#allocation9], %s732_s1, %s732_s1, %s733_s9  }
   0xa   :  { %s734_s13 = smov [#allocation2]   ;;  %s44_s16 = sshll.u32 %s809_s2, 4  ;;  %s45_s16 = int_to_ptr.hbm [resolvable:$true] %s44_s16 }
   0xb   :  { %s23_s3 = sshll.u32 %s734_s13, 4  ;;  %s735_s17 = smov [#allocation7]   ;;  %s24_s3 = int_to_ptr.vmem [resolvable:$true] %s23_s3 }
   0xc   :  { %26 = dma.hbm_to_vmem [thread:$0]  %s22_s12, 128, %s24_s3, [#allocation3]  }
   0xd   :  { %s46_s18 = sshll.u32 %s735_s17, 4  ;;  %s70_s21 = sshll.u32 %s811_s4, 4  ;;  %s47_s18 = int_to_ptr.vmem [resolvable:$true] %s46_s18  ;;  %s71_s21 = int_to_ptr.hbm [resolvable:$true] %s70_s21 }
   0xe   :  { %52 = dma.hbm_to_vmem [thread:$0]  %s45_s16, 1792, %s47_s18, [#allocation6], %s729_s29, %s729_s29, %s730_s30  }
   0xf   :  { %s736_s0 = smov [#allocation10]  }
  0x10   :  { %s72_s22 = sshll.u32 %s736_s0, 4  ;;  %s73_s22 = int_to_ptr.vmem [resolvable:$true] %s72_s22 }
  0x11   :  { %78 = dma.hbm_to_vmem [thread:$0]  %s71_s21, 256, %s73_s22, [#allocation9], %s729_s29, %s729_s29, %s730_s30  }
  0x12   :  { %720 = dma.done.wait [#allocation3], 128  }
  0x13   :  { %721 = vsyncadd [#allocation3], 4294967168 }
  0x14   :  { %722 = dma.done.wait [#allocation6], 2048  }
  0x15   :  { %723 = vsyncadd [#allocation6], 4294965248 }
  0x16   :  { %724 = dma.done.wait [#allocation9], 384  }
  0x17   :  { %725 = vsyncadd [#allocation9], 4294966912  ;;  %v543_v0 = vld [vmem:[#allocation5 + $0x8] sm:$0xff]  ;;  %v542_v1 = vld [vmem:[#allocation5] sm:$0xff]  ;;  %vm118_vm0 = vcmask 261120   ;;  %vm232_vm4 = vcmask 916480  }
  0x18   :  { %128 = vmatpush.bf16.msra.mxu0 %v543_v0  ;;  %v100_v2 = vld [vmem:[#allocation2] sm:$0xff]  ;;  %v550_v4 = vld [vmem:[#allocation7 + $0x30] sm:$0xff]  ;;  %v548_v8 = vld [vmem:[#allocation7 + $0x20] sm:$0xff]  ;;  %s737_s2 = smov [#allocation11]   ;;  %s452_s25 = sshll.u32 %s813_s6, 4  ;;  %s453_s25 = int_to_ptr.hbm [resolvable:$true] %s452_s25 }
  0x19   :  { %v101_v3 = vpack.c.bf16 %v100_v2, %v100_v2  ;;  %237 = vmatpush.bf16.msra.mxu1 %v550_v4  ;;  %v549_v5 = vld [vmem:[#allocation7 + $0x28] sm:$0xff]  ;;  %v547_v12 = vld [vmem:[#allocation7 + $0x18] sm:$0xff]  ;;  %v546_v18 = vld [vmem:[#allocation7 + $0x10] sm:$0xff]  ;;  %s450_s4 = sshll.u32 %s737_s2, 4  ;;  %s451_s4 = int_to_ptr.vmem [resolvable:$true] %s450_s4 }
  0x1a   :  { %v545_v23 = vld [vmem:[#allocation7 + $0x8] sm:$0xff]  ;;  %v544_v28 = vld [vmem:[#allocation7] sm:$0xff]  ;;  %v135_v38 = vld [vmem:[#allocation8] sm:$0x3] }
  0x1b   :  { %v169_v42 = vperm.slane %v135_v38, 0  ;;  %v171_v45 = vperm.slane %v135_v38, 1  ;;  %v557_v51 = vld [vmem:[#allocation7 + $0x68] sm:$0xff]  ;;  %v556_v52 = vld [vmem:[#allocation7 + $0x60] sm:$0xff]  ;;  %v555_v55 = vld [vmem:[#allocation7 + $0x58] sm:$0xff] }
  0x1c   :  { %129 = vmatpush.bf16.msra.mxu0 %v542_v1  ;;  %352 = vmatpush.bf16.msra.mxu2 %v557_v51  ;;  %v554_v59 = vld [vmem:[#allocation7 + $0x50] sm:$0xff]  ;;  %v553_v1 = vld [vmem:[#allocation7 + $0x48] sm:$0xff]  ;;  %v558_v51 = vld [vmem:[#allocation10] sm:$0xff] }
  0x1d   :  { %238 = vmatpush.bf16.msra.mxu1 %v549_v5 }
  0x1f   :  { %474 = vmatmul.msk.bf16.vlgmr.msra.gmra.mxu0 %vm118_vm0, %v101_v3 }
  0x20   :  { %353 = vmatpush.bf16.msra.mxu2 %v556_v52 }
  0x21   :  { %239 = vmatpush.bf16.msra.mxu1 %v548_v8 }
  0x24   :  { %354 = vmatpush.bf16.msra.mxu2 %v555_v55 }
  0x25   :  { %240 = vmatpush.bf16.msra.mxu1 %v547_v12 }
  0x28   :  { %355 = vmatpush.bf16.msra.mxu2 %v554_v59 }
  0x29   :  { %241 = vmatpush.bf16.msra.mxu1 %v546_v18 }
  0x2c   :  { %356 = vmatpush.bf16.msra.mxu2 %v553_v1 }
  0x2d   :  { %242 = vmatpush.bf16.msra.mxu1 %v545_v23 }
  0x31   :  { %243 = vmatpush.bf16.msra.mxu1 %v544_v28 }
  0x9c   :  { %v131_v6 = vpop.f32.mrf.mxu0 }
  0x9d   :  { %v136_v7 = vperm.slane %v131_v6, 0 }
  0x9f   :  { %v137_v9 = vsub.f32 %v131_v6, %v136_v7  ;;  %v552_v6 = vld [vmem:[#allocation7 + $0x40] sm:$0xff] }
  0xa0   :  { %357 = vmatpush.bf16.msra.mxu2 %v552_v6 }
  0xa1   :  { %v138_v10 = vrot.slane %v137_v9, 4  ;;  %v144_v11 = vmul.f32 %v137_v9, %v137_v9 }
  0xa3   :  { %v139_v13 = vadd.f32 %v138_v10, %v137_v9  ;;  %v145_v14 = vrot.slane %v144_v11, 4 }
  0xa4   :  { %v133_v15 = vpop.f32.mrf.mxu0 }
  0xa5   :  { %v140_v16 = vrot.slane %v139_v13, 2  ;;  %v146_v17 = vadd.f32 %v145_v14, %v144_v11  ;;  %v551_v11 = vld [vmem:[#allocation7 + $0x38] sm:$0xff] }
  0xa6   :  { %358 = vmatpush.bf16.msra.mxu2 %v551_v11 }
  0xa7   :  { %v141_v19 = vadd.f32 %v140_v16, %v139_v13  ;;  %v147_v20 = vrot.slane %v146_v17, 2 }
  0xa9   :  { %v142_v21 = vrot.slane %v141_v19, 1  ;;  %v148_v22 = vadd.f32 %v147_v20, %v146_v17 }
  0xab   :  { %v143_v24 = vadd.f32 %v142_v21, %v141_v19  ;;  %v149_v25 = vrot.slane %v148_v22, 1  ;;  %v250_v21 = vld [vmem:[#allocation8 + $0x2] sm:$0x3] }
  0xac   :  { %v286_v28 = vperm.slane %v250_v21, 1 }
  0xad   :  { %v150_v26 = vadd.f32 %v149_v25, %v148_v22  ;;  %v151_v27 = vmul.f32 0.125, %v143_v24  ;;  %v284_v25 = vperm.slane %v250_v21, 0 }
  0xaf   :  { %v152_v29 = vmul.f32 0.125, %v150_v26  ;;  %v153_v30 = vmul.f32 %v151_v27, %v151_v27  ;;  %v156_v41 = vsub.f32 %v137_v9, %v151_v27 }
  0xb1   :  { %v154_v31 = vsub.f32 %v152_v29, %v153_v30 }
  0xb3   :  { %v155_v32 = vmax.f32 %v154_v31, 0.0 }
  0xb5   :  { %v157_v33 = vadd.f32 1e-05, %v155_v32 }
  0xb7   :  { %570 = vrsqrt.f32 %v157_v33  ;;  %vm164_vm2 = vweird.f32 %v157_v33 }
  0xbd   :  { %v571_v34 = vpop.eup %570 }
  0xbe   :  { %v159_v35 = vmul.f32 %v571_v34, %v157_v33  ;;  %vm165_vm1 = vweird.f32 %v571_v34 }
  0xbf   :  { %vm166_vm3 = vmor %vm164_vm2, %vm165_vm1 }
  0xc0   :  { %v160_v36 = vmul.f32 %v571_v34, %v159_v35 }
  0xc2   :  { %v161_v37 = vmul.f32 0.5, %v160_v36 }
  0xc4   :  { %v162_v39 = vsub.f32 1.5, %v161_v37 }
  0xc6   :  { %v163_v40 = vmul.f32 %v571_v34, %v162_v39 }
  0xc8   :  { %v167_v43 = vsel %vm166_vm3, %v571_v34, %v163_v40 }
  0xc9   :  { %v168_v44 = vmul.f32 %v167_v43, %v156_v41 }
  0xcb   :  { %v170_v46 = vmul.f32 %v169_v42, %v168_v44 }
  0xcd   :  { %v172_v47 = vadd.f32 %v171_v45, %v170_v46 }
  0xcf   :  { %v173_v48 = vmul.f32 0.5, %v172_v47 }
  0xd1   :  { %v174_v49 = vmax.f32 %v172_v47, %v173_v48  ;;  %v559_v48 = vld [vmem:[#allocation10 + $0x8] sm:$0xff] }
  0xd2   :  { %435 = vmatpush.bf16.msra.mxu3 %v559_v48 }
  0xd3   :  { %v175_v50 = vpack.c.bf16 %v174_v49, %v174_v49 }
  0xd5   :  { %503 = vmatmul.msk.bf16.vlgmr.msra.gmra.mxu1 %vm232_vm4, %v175_v50 }
  0xd6   :  { %436 = vmatpush.bf16.msra.mxu3 %v558_v51 }
 0x152   :  { %v245_v53 = vpop.f32.mrf.mxu1 }
 0x153   :  { %v251_v54 = vperm.slane %v245_v53, 0 }
 0x155   :  { %v252_v56 = vsub.f32 %v245_v53, %v251_v54 }
 0x157   :  { %v253_v57 = vrot.slane %v252_v56, 4  ;;  %v259_v58 = vmul.f32 %v252_v56, %v252_v56 }
 0x159   :  { %v254_v60 = vadd.f32 %v253_v57, %v252_v56  ;;  %v260_v61 = vrot.slane %v259_v58, 4 }
 0x15a   :  { %v247_v62 = vpop.f32.mrf.mxu1 }
 0x15b   :  { %v255_v63 = vrot.slane %v254_v60, 2  ;;  %v261_v0 = vadd.f32 %v260_v61, %v259_v58 }
 0x15d   :  { %v256_v2 = vadd.f32 %v255_v63, %v254_v60  ;;  %v262_v3 = vrot.slane %v261_v0, 2 }
 0x15f   :  { %v257_v4 = vrot.slane %v256_v2, 1  ;;  %v263_v5 = vadd.f32 %v262_v3, %v261_v0  ;;  %v365_v0 = vld [vmem:[#allocation8 + $0x4] sm:$0x3] }
 0x160   :  { %v399_v3 = vperm.slane %v365_v0, 0  ;;  %v401_v6 = vperm.slane %v365_v0, 1 }
 0x161   :  { %v258_v7 = vadd.f32 %v257_v4, %v256_v2  ;;  %v264_v8 = vrot.slane %v263_v5, 1 }
 0x163   :  { %v265_v9 = vadd.f32 %v264_v8, %v263_v5  ;;  %v266_v10 = vmul.f32 0.125, %v258_v7 }
 0x165   :  { %v267_v12 = vmul.f32 0.125, %v265_v9  ;;  %v268_v13 = vmul.f32 %v266_v10, %v266_v10  ;;  %v271_v24 = vsub.f32 %v252_v56, %v266_v10 }
 0x167   :  { %v269_v14 = vsub.f32 %v267_v12, %v268_v13  ;;  %v412_v12 = vld [vmem:[#allocation8 + $0x6] sm:$0x3] }
 0x168   :  { %v413_v13 = vperm.slane %v412_v12, 0 }
 0x169   :  { %v270_v15 = vmax.f32 %v269_v14, 0.0 }
 0x16b   :  { %v272_v16 = vadd.f32 1e-05, %v270_v15 }
 0x16d   :  { %572 = vrsqrt.f32 %v272_v16  ;;  %vm279_vm6 = vweird.f32 %v272_v16 }
 0x173   :  { %v573_v17 = vpop.eup %572 }
 0x174   :  { %v274_v18 = vmul.f32 %v573_v17, %v272_v16  ;;  %vm280_vm5 = vweird.f32 %v573_v17 }
 0x175   :  { %vm281_vm7 = vmor %vm279_vm6, %vm280_vm5 }
 0x176   :  { %v275_v19 = vmul.f32 %v573_v17, %v274_v18 }
 0x178   :  { %v276_v20 = vmul.f32 0.5, %v275_v19 }
 0x17a   :  { %v277_v22 = vsub.f32 1.5, %v276_v20 }
 0x17c   :  { %v278_v23 = vmul.f32 %v573_v17, %v277_v22 }
 0x17e   :  { %v282_v26 = vsel %vm281_vm7, %v573_v17, %v278_v23 }
 0x17f   :  { %v283_v27 = vmul.f32 %v282_v26, %v271_v24 }
 0x181   :  { %v285_v29 = vmul.f32 %v284_v25, %v283_v27 }
 0x183   :  { %v287_v30 = vadd.f32 %v286_v28, %v285_v29 }
 0x185   :  { %v288_v31 = vmul.f32 0.5, %v287_v30 }
 0x187   :  { %v289_v32 = vmax.f32 %v287_v30, %v288_v31 }
 0x189   :  { %v290_v33 = vpack.c.bf16 %v289_v32, %v289_v32 }
 0x18b   :  { %532 = vmatmul.msk.bf16.vlgmr.msra.gmra.mxu2 %vm232_vm4, %v290_v33 }
 0x20e   :  { %v360_v34 = vpop.f32.mrf.mxu2 }
 0x20f   :  { %v366_v35 = vperm.slane %v360_v34, 0 }
 0x211   :  { %v367_v36 = vsub.f32 %v360_v34, %v366_v35 }
 0x213   :  { %v368_v37 = vrot.slane %v367_v36, 4  ;;  %v374_v38 = vmul.f32 %v367_v36, %v367_v36 }
 0x215   :  { %v369_v39 = vadd.f32 %v368_v37, %v367_v36  ;;  %v375_v40 = vrot.slane %v374_v38, 4 }
 0x216   :  { %v362_v41 = vpop.f32.mrf.mxu2 }
 0x217   :  { %v370_v42 = vrot.slane %v369_v39, 2  ;;  %v376_v43 = vadd.f32 %v375_v40, %v374_v38 }
 0x219   :  { %v371_v44 = vadd.f32 %v370_v42, %v369_v39  ;;  %v377_v45 = vrot.slane %v376_v43, 2 }
 0x21b   :  { %v372_v46 = vrot.slane %v371_v44, 1  ;;  %v378_v47 = vadd.f32 %v377_v45, %v376_v43 }
 0x21d   :  { %v373_v49 = vadd.f32 %v372_v46, %v371_v44  ;;  %v379_v50 = vrot.slane %v378_v47, 1 }
 0x21f   :  { %v380_v52 = vadd.f32 %v379_v50, %v378_v47  ;;  %v381_v53 = vmul.f32 0.125, %v373_v49 }
 0x221   :  { %v382_v54 = vmul.f32 0.125, %v380_v52  ;;  %v383_v55 = vmul.f32 %v381_v53, %v381_v53  ;;  %v386_v2 = vsub.f32 %v367_v36, %v381_v53 }
 0x223   :  { %v384_v56 = vsub.f32 %v382_v54, %v383_v55 }
 0x225   :  { %v385_v57 = vmax.f32 %v384_v56, 0.0 }
 0x227   :  { %v387_v58 = vadd.f32 1e-05, %v385_v57 }
 0x229   :  { %574 = vrsqrt.f32 %v387_v58  ;;  %vm394_vm9 = vweird.f32 %v387_v58 }
 0x22f   :  { %v575_v59 = vpop.eup %574 }
 0x230   :  { %v389_v60 = vmul.f32 %v575_v59, %v387_v58  ;;  %vm395_vm8 = vweird.f32 %v575_v59 }
 0x231   :  { %vm396_vm10 = vmor %vm394_vm9, %vm395_vm8 }
 0x232   :  { %v390_v61 = vmul.f32 %v575_v59, %v389_v60 }
 0x234   :  { %v391_v62 = vmul.f32 0.5, %v390_v61 }
 0x236   :  { %v392_v63 = vsub.f32 1.5, %v391_v62 }
 0x238   :  { %v393_v1 = vmul.f32 %v575_v59, %v392_v63 }
 0x23a   :  { %v397_v4 = vsel %vm396_vm10, %v575_v59, %v393_v1 }
 0x23b   :  { %v398_v5 = vmul.f32 %v397_v4, %v386_v2 }
 0x23d   :  { %v400_v7 = vmul.f32 %v399_v3, %v398_v5 }
 0x23f   :  { %v402_v8 = vadd.f32 %v401_v6, %v400_v7 }
 0x241   :  { %v403_v9 = vmul.f32 0.5, %v402_v8 }
 0x243   :  { %v404_v10 = vmax.f32 %v402_v8, %v403_v9 }
 0x245   :  { %v406_v11 = vpack.c.bf16 %v404_v10, %v404_v10  ;;  %405 = vst [vmem:[#allocation11] sm:$0xff] %v404_v10 }
 0x246   :  { %455 = dma.vmem_to_hbm [thread:$0]  %s451_s4, 128, %s453_s25, [#allocation4]  }
 0x247   :  { %541 = vmatmul.msk.bf16.vlgmr.msra.gmra.mxu3 %vm118_vm0, %v406_v11 }
 0x2ca   :  { %v438_v14 = vpop.f32.mrf.mxu3 }
 0x2cb   :  { %v439_v15 = vadd.f32 %v438_v14, %v413_v13 }
 0x2cd   :  { %442 = vst [vmem:[%s812_s5] sm:$0xff] %v439_v15 }
 0x2d2   :  { %v440_v16 = vpop.f32.mrf.mxu3 }
 0x2d3   :  { %726 = dma.done.wait [#allocation4], 128  }
 0x2d4   :  { %727 = vsyncadd [#allocation4], 4294967168 }
 0x2d5   :  { %462 = vsyncpa [#allocation3], 1 }
 0x2d6   :  { %463 = vsyncpa [#allocation6], 1 }
 0x2d7   :  { %464 = vsyncpa [#allocation9], 1 }
 0x2d8   :  { %465 = vsyncpa [#allocation4], 1 }

</bundles_post_ra>
